<compile_context>
chip_gen: v7x
topology: tpu7x:2x2x1
jax: 0.10.0
libtpu: 0.0.40
codegen_flags: <defaults>
</compile_context>

<pallas_src>
import functools

import jax
import jax.numpy as jnp
from jax.experimental import pallas as pl
from jax.experimental.pallas import tpu as pltpu

K_IN = 1845        # fc1 input features (un-padded; full-dim blocks are legal)
H = 64             # hidden width
N_CLASSES = 2
N_PAD = 128        # fc4 output padded to a full lane vector (unmasked stores)

VMEM_LIMIT = 48 * 1024 * 1024   # < v7x 64 MiB physical; v5e/v6e have 128 MiB


def mlp_kernel(x_ref, w1_ref, b1_ref, w2_ref, b2_ref,
               w3_ref, b3_ref, w4_ref, b4_ref, out_ref):
    # fc1: cast the x tile to bf16 in-kernel (no HBM round trip in the wrapper);
    # bf16 x bf16 -> f32 accumulate on the MXU (dominant matmul).
    xb = x_ref[...].astype(jnp.bfloat16)
    h = jnp.dot(xb, w1_ref[...], preferred_element_type=jnp.float32)
    h = jnp.maximum(h + b1_ref[...], 0.0)

    # fc2 / fc3: tiny 64x64 bf16 matmuls, f32 accumulate, f32 bias + relu.
    h = jnp.dot(h.astype(jnp.bfloat16), w2_ref[...],
                preferred_element_type=jnp.float32)
    h = jnp.maximum(h + b2_ref[...], 0.0)
    h = jnp.dot(h.astype(jnp.bfloat16), w3_ref[...],
                preferred_element_type=jnp.float32)
    h = jnp.maximum(h + b3_ref[...], 0.0)

    # fc4 padded to 128 output lanes -> lane-dense, unmasked stores.
    logits = jnp.dot(h.astype(jnp.bfloat16), w4_ref[...],
                     preferred_element_type=jnp.float32) + b4_ref[...]

    # 2-class log-softmax from the two real columns only (VPU/EUP, no 128-wide
    # cross-lane reduce).  Valid because padded w4/b4 columns are exactly zero.
    l0 = logits[:, 0:1]
    l1 = logits[:, 1:2]
    m = jnp.maximum(l0, l1)
    lse = m + jnp.log(jnp.exp(l0 - m) + jnp.exp(l1 - m))
    out_ref[...] = (logits - lse).astype(out_ref.dtype)   # cols >= 2 sliced off later


def _round_up(n, m):
    return ((n + m - 1) // m) * m


def _batch_tile_cap():
    """Per-generation batch-tile cap (VMEM vs per-step-overhead tradeoff)."""
    try:
        kind = jax.devices()[0].device_kind.lower()
    except Exception:
        return 1024
    if "v5 lite" in kind or "v5e" in kind or "v5lite" in kind:
        return 512           # 0.82 TB/s HBM: step overhead already small at 512 rows
    if "v6" in kind:
        return 1536          # 128 MiB physical VMEM, ~1.4 TB/s HBM
    if "7" in kind:
        return 2048          # ~3.2 TB/s HBM: big tiles matter most; < 48 MiB VMEM
    return 1024


def _pick_tm(B, cap):
    """Batch tile: large (amortize ~0.35us/step), >=2 tiles for B>=64 so v7x
    megacore uses both TensorCores, and never padded to a wasteful multiple."""
    n_tiles = max(1, pl.cdiv(B, cap))
    if B >= 64:
        n_tiles = max(n_tiles, 2)
    tm = min(cap, _round_up(pl.cdiv(B, n_tiles), 16))
    if tm >= B:
        tm = B               # single exact full-dim block: no padded rows at all
    return tm


@functools.partial(jax.jit, static_argnames=("tm",))
def net_forward(x, params, *, tm=None):
    """x: (B, 1845) float32 (or bfloat16); params from init_params (kernel-ready)."""
    B = x.shape[0]
    if tm is None:
        tm = _pick_tm(B, _batch_tile_cap())
    grid = (pl.cdiv(B, tm),)   # ragged last tile handled by Pallas, not the wrapper

    args = (x,
            params["w1"], params["b1"],
            params["w2"], params["b2"],
            params["w3"], params["b3"],
            params["w4"], params["b4"])

    def resident(a):
        # constant index_map -> fetched once, stays VMEM-resident across grid steps
        return pl.BlockSpec(a.shape, lambda i: (0,) * a.ndim)

    in_specs = ([pl.BlockSpec((tm, K_IN), lambda i: (i, 0))]
                + [resident(a) for a in args[1:]])

    rows = grid[0] * tm
    flops = 2 * rows * (K_IN * H + H * H + H * H + H * N_PAD)
    bytes_accessed = (sum(int(a.size) * a.dtype.itemsize for a in args)
                      + B * N_PAD * 2)

    out = pl.pallas_call(
        mlp_kernel,
        out_shape=jax.ShapeDtypeStruct((B, N_PAD), jnp.bfloat16),
        grid_spec=pltpu.PrefetchScalarGridSpec(
            num_scalar_prefetch=0,
            grid=grid,
            in_specs=in_specs,
            out_specs=pl.BlockSpec((tm, N_PAD), lambda i: (i, 0)),
        ),
        compiler_params=pltpu.CompilerParams(
            dimension_semantics=("parallel",),
            vmem_limit_bytes=VMEM_LIMIT),
        cost_estimate=pl.CostEstimate(
            flops=flops, transcendentals=3 * rows, bytes_accessed=bytes_accessed),
    )(*args)

    # Match the PyTorch module's (B, 2) float32 log-probs.
    return out[:, :N_CLASSES].astype(jnp.float32)


def init_params(key):
    """nn.Linear-style init (U(-1/sqrt(fan_in), +)), stored kernel-ready:
    weights in bf16 (w4 zero-padded 2 -> 128 output lanes), biases f32."""
    dims = [(K_IN, H), (H, H), (H, H), (H, N_CLASSES)]
    params = {}
    for i, (fan_in, fan_out) in enumerate(dims, start=1):
        key, kw, kb = jax.random.split(key, 3)
        bound = 1.0 / jnp.sqrt(jnp.float32(fan_in))
        params[f"w{i}"] = jax.random.uniform(
            kw, (fan_in, fan_out), jnp.float32, minval=-bound, maxval=bound)
        params[f"b{i}"] = jax.random.uniform(
            kb, (1, fan_out), jnp.float32, minval=-bound, maxval=bound)

    for i in (1, 2, 3):
        params[f"w{i}"] = params[f"w{i}"].astype(jnp.bfloat16)
    params["w4"] = jnp.zeros((H, N_PAD), jnp.bfloat16).at[:, :N_CLASSES].set(
        params["w4"].astype(jnp.bfloat16))
    params["b4"] = jnp.zeros((1, N_PAD), jnp.float32).at[:, :N_CLASSES].set(
        params["b4"])
    return params


def reference_forward(x, p):
    """Pure-JAX reference with the same bf16 quantization as the kernel."""
    hp = jax.lax.Precision.HIGHEST
    f32 = jnp.float32
    h = x.astype(jnp.bfloat16).astype(f32)
    h = jnp.maximum(jnp.dot(h, p["w1"].astype(f32), precision=hp) + p["b1"], 0.0)
    h = h.astype(jnp.bfloat16).astype(f32)
    h = jnp.maximum(jnp.dot(h, p["w2"].astype(f32), precision=hp) + p["b2"], 0.0)
    h = h.astype(jnp.bfloat16).astype(f32)
    h = jnp.maximum(jnp.dot(h, p["w3"].astype(f32), precision=hp) + p["b3"], 0.0)
    h = h.astype(jnp.bfloat16).astype(f32)
    logits = (jnp.dot(h, p["w4"][:, :N_CLASSES].astype(f32), precision=hp)
              + p["b4"][:, :N_CLASSES])
    return jax.nn.log_softmax(logits, axis=1)


if __name__ == "__main__":
    key = jax.random.PRNGKey(0)
    key, kx = jax.random.split(key)

    B = 8
    x = jax.random.normal(kx, (B, K_IN), dtype=jnp.float32)
    params = init_params(key)

    out = net_forward(x, params)
    out = jax.block_until_ready(out)

    ref = reference_forward(x, params)
    assert out.shape == (B, N_CLASSES)
    max_err = jnp.max(jnp.abs(out - ref))
    assert jnp.allclose(out, ref, atol=2e-2, rtol=2e-2), (
        f"mismatch vs reference, max abs err = {max_err}")

    print("KERNEL_OK")
</pallas_src>

<mosaic_0001>
module attributes {stable_mosaic.version = 11 : i64} {
  func.func @mlp_kernel(%arg0: i32, %arg1: memref<8x1845xf32, #tpu.memory_space<vmem>>, %arg2: memref<1845x64xbf16, #tpu.memory_space<vmem>>, %arg3: memref<1x64xf32, #tpu.memory_space<vmem>>, %arg4: memref<64x64xbf16, #tpu.memory_space<vmem>>, %arg5: memref<1x64xf32, #tpu.memory_space<vmem>>, %arg6: memref<64x64xbf16, #tpu.memory_space<vmem>>, %arg7: memref<1x64xf32, #tpu.memory_space<vmem>>, %arg8: memref<64x128xbf16, #tpu.memory_space<vmem>>, %arg9: memref<1x128xf32, #tpu.memory_space<vmem>>, %arg10: memref<8x128xbf16, #tpu.memory_space<vmem>>) attributes {dimension_semantics = [#tpu.dimension_semantics<parallel>], iteration_bounds = array<i64: 1>, scalar_prefetch = 0 : i64, scratch_operands = 0 : i64, tpu.core_type = #tpu.core_type<tc>, window_params = [{transform_indices = @transform_0, window_bounds = array<i64: 8, 1845>}, {pipeline_mode = #tpu.pipeline_mode<synchronous>, transform_indices = @transform_1, window_bounds = array<i64: 1845, 64>}, {pipeline_mode = #tpu.pipeline_mode<synchronous>, transform_indices = @transform_2, window_bounds = array<i64: 1, 64>}, {pipeline_mode = #tpu.pipeline_mode<synchronous>, transform_indices = @transform_3, window_bounds = array<i64: 64, 64>}, {pipeline_mode = #tpu.pipeline_mode<synchronous>, transform_indices = @transform_4, window_bounds = array<i64: 1, 64>}, {pipeline_mode = #tpu.pipeline_mode<synchronous>, transform_indices = @transform_5, window_bounds = array<i64: 64, 64>}, {pipeline_mode = #tpu.pipeline_mode<synchronous>, transform_indices = @transform_6, window_bounds = array<i64: 1, 64>}, {pipeline_mode = #tpu.pipeline_mode<synchronous>, transform_indices = @transform_7, window_bounds = array<i64: 64, 128>}, {pipeline_mode = #tpu.pipeline_mode<synchronous>, transform_indices = @transform_8, window_bounds = array<i64: 1, 128>}, {transform_indices = @transform_9, window_bounds = array<i64: 8, 128>}]} {
    %c0 = arith.constant 0 : index
    %c0_0 = arith.constant 0 : index
    %0 = vector.load %arg1[%c0, %c0_0] : memref<8x1845xf32, #tpu.memory_space<vmem>>, vector<8x1845xf32>
    %1 = arith.truncf %0 : vector<8x1845xf32> to vector<8x1845xbf16>
    %c0_1 = arith.constant 0 : index
    %c0_2 = arith.constant 0 : index
    %2 = vector.load %arg2[%c0_1, %c0_2] : memref<1845x64xbf16, #tpu.memory_space<vmem>>, vector<1845x64xbf16>
    %cst = arith.constant dense<0.000000e+00> : vector<8x64xf32>
    %3 = tpu.matmul %1, %2, %cst {dimension_numbers = #tpu.dot_dimension_numbers<[1], [0], [0], [1], [0, 0, 1, 1], [], []>} : vector<8x1845xbf16>, vector<1845x64xbf16>, vector<8x64xf32> -> vector<8x64xf32>
    %c0_3 = arith.constant 0 : index
    %c0_4 = arith.constant 0 : index
    %4 = vector.load %arg3[%c0_3, %c0_4] : memref<1x64xf32, #tpu.memory_space<vmem>>, vector<1x64xf32>
    %5 = vector.broadcast %4 : vector<1x64xf32> to vector<8x64xf32>
    %6 = arith.addf %3, %5 : vector<8x64xf32>
    %cst_5 = arith.constant 0.000000e+00 : f32
    %7 = vector.broadcast %cst_5 : f32 to vector<8x64xf32>
    %8 = arith.maximumf %6, %7 : vector<8x64xf32>
    %9 = arith.truncf %8 : vector<8x64xf32> to vector<8x64xbf16>
    %c0_6 = arith.constant 0 : index
    %c0_7 = arith.constant 0 : index
    %10 = vector.load %arg4[%c0_6, %c0_7] : memref<64x64xbf16, #tpu.memory_space<vmem>>, vector<64x64xbf16>
    %cst_8 = arith.constant dense<0.000000e+00> : vector<8x64xf32>
    %11 = tpu.matmul %9, %10, %cst_8 {dimension_numbers = #tpu.dot_dimension_numbers<[1], [0], [0], [1], [0, 0, 1, 1], [], []>} : vector<8x64xbf16>, vector<64x64xbf16>, vector<8x64xf32> -> vector<8x64xf32>
    %c0_9 = arith.constant 0 : index
    %c0_10 = arith.constant 0 : index
    %12 = vector.load %arg5[%c0_9, %c0_10] : memref<1x64xf32, #tpu.memory_space<vmem>>, vector<1x64xf32>
    %13 = vector.broadcast %12 : vector<1x64xf32> to vector<8x64xf32>
    %14 = arith.addf %11, %13 : vector<8x64xf32>
    %cst_11 = arith.constant 0.000000e+00 : f32
    %15 = vector.broadcast %cst_11 : f32 to vector<8x64xf32>
    %16 = arith.maximumf %14, %15 : vector<8x64xf32>
    %17 = arith.truncf %16 : vector<8x64xf32> to vector<8x64xbf16>
    %c0_12 = arith.constant 0 : index
    %c0_13 = arith.constant 0 : index
    %18 = vector.load %arg6[%c0_12, %c0_13] : memref<64x64xbf16, #tpu.memory_space<vmem>>, vector<64x64xbf16>
    %cst_14 = arith.constant dense<0.000000e+00> : vector<8x64xf32>
    %19 = tpu.matmul %17, %18, %cst_14 {dimension_numbers = #tpu.dot_dimension_numbers<[1], [0], [0], [1], [0, 0, 1, 1], [], []>} : vector<8x64xbf16>, vector<64x64xbf16>, vector<8x64xf32> -> vector<8x64xf32>
    %c0_15 = arith.constant 0 : index
    %c0_16 = arith.constant 0 : index
    %20 = vector.load %arg7[%c0_15, %c0_16] : memref<1x64xf32, #tpu.memory_space<vmem>>, vector<1x64xf32>
    %21 = vector.broadcast %20 : vector<1x64xf32> to vector<8x64xf32>
    %22 = arith.addf %19, %21 : vector<8x64xf32>
    %cst_17 = arith.constant 0.000000e+00 : f32
    %23 = vector.broadcast %cst_17 : f32 to vector<8x64xf32>
    %24 = arith.maximumf %22, %23 : vector<8x64xf32>
    %25 = arith.truncf %24 : vector<8x64xf32> to vector<8x64xbf16>
    %c0_18 = arith.constant 0 : index
    %c0_19 = arith.constant 0 : index
    %26 = vector.load %arg8[%c0_18, %c0_19] : memref<64x128xbf16, #tpu.memory_space<vmem>>, vector<64x128xbf16>
    %cst_20 = arith.constant dense<0.000000e+00> : vector<8x128xf32>
    %27 = tpu.matmul %25, %26, %cst_20 {dimension_numbers = #tpu.dot_dimension_numbers<[1], [0], [0], [1], [0, 0, 1, 1], [], []>} : vector<8x64xbf16>, vector<64x128xbf16>, vector<8x128xf32> -> vector<8x128xf32>
    %c0_21 = arith.constant 0 : index
    %c0_22 = arith.constant 0 : index
    %28 = vector.load %arg9[%c0_21, %c0_22] : memref<1x128xf32, #tpu.memory_space<vmem>>, vector<1x128xf32>
    %29 = vector.broadcast %28 : vector<1x128xf32> to vector<8x128xf32>
    %30 = arith.addf %27, %29 : vector<8x128xf32>
    %31 = vector.extract_strided_slice %30 {offsets = [0, 0], sizes = [8, 1], strides = [1, 1]} : vector<8x128xf32> to vector<8x1xf32>
    %32 = vector.extract_strided_slice %30 {offsets = [0, 1], sizes = [8, 1], strides = [1, 1]} : vector<8x128xf32> to vector<8x1xf32>
    %33 = arith.maximumf %31, %32 : vector<8x1xf32>
    %34 = arith.subf %31, %33 : vector<8x1xf32>
    %35 = math.exp %34 : vector<8x1xf32>
    %36 = arith.subf %32, %33 : vector<8x1xf32>
    %37 = math.exp %36 : vector<8x1xf32>
    %38 = arith.addf %35, %37 : vector<8x1xf32>
    %39 = math.log %38 : vector<8x1xf32>
    %40 = arith.addf %33, %39 : vector<8x1xf32>
    %41 = vector.broadcast %40 : vector<8x1xf32> to vector<8x128xf32>
    %42 = arith.subf %30, %41 : vector<8x128xf32>
    %43 = arith.truncf %42 : vector<8x128xf32> to vector<8x128xbf16>
    %c0_23 = arith.constant 0 : index
    %c0_24 = arith.constant 0 : index
    %44 = vector.load %arg10[%c0_23, %c0_24] : memref<8x128xbf16, #tpu.memory_space<vmem>>, vector<8x128xbf16>
    tpu.vector_store %arg10[%c0_23, %c0_24], %43 {strides = array<i32>} : memref<8x128xbf16, #tpu.memory_space<vmem>>, vector<8x128xbf16>,
    return
  }
  func.func @transform_0(%arg0: i32) -> (i32, i32) {
    %c0_i32 = arith.constant 0 : i32
    %c0_i32_0 = arith.constant 0 : i32
    return %arg0, %c0_i32 : i32, i32
  }
  func.func @transform_1(%arg0: i32) -> (i32, i32) {
    %c0_i32 = arith.constant 0 : i32
    %c0_i32_0 = arith.constant 0 : i32
    %c0_i32_1 = arith.constant 0 : i32
    return %c0_i32, %c0_i32_0 : i32, i32
  }
  func.func @transform_2(%arg0: i32) -> (i32, i32) {
    %c0_i32 = arith.constant 0 : i32
    %c0_i32_0 = arith.constant 0 : i32
    %c0_i32_1 = arith.constant 0 : i32
    return %c0_i32, %c0_i32_0 : i32, i32
  }
  func.func @transform_3(%arg0: i32) -> (i32, i32) {
    %c0_i32 = arith.constant 0 : i32
    %c0_i32_0 = arith.constant 0 : i32
    %c0_i32_1 = arith.constant 0 : i32
    return %c0_i32, %c0_i32_0 : i32, i32
  }
  func.func @transform_4(%arg0: i32) -> (i32, i32) {
    %c0_i32 = arith.constant 0 : i32
    %c0_i32_0 = arith.constant 0 : i32
    %c0_i32_1 = arith.constant 0 : i32
    return %c0_i32, %c0_i32_0 : i32, i32
  }
  func.func @transform_5(%arg0: i32) -> (i32, i32) {
    %c0_i32 = arith.constant 0 : i32
    %c0_i32_0 = arith.constant 0 : i32
    %c0_i32_1 = arith.constant 0 : i32
    return %c0_i32, %c0_i32_0 : i32, i32
  }
  func.func @transform_6(%arg0: i32) -> (i32, i32) {
    %c0_i32 = arith.constant 0 : i32
    %c0_i32_0 = arith.constant 0 : i32
    %c0_i32_1 = arith.constant 0 : i32
    return %c0_i32, %c0_i32_0 : i32, i32
  }
  func.func @transform_7(%arg0: i32) -> (i32, i32) {
    %c0_i32 = arith.constant 0 : i32
    %c0_i32_0 = arith.constant 0 : i32
    %c0_i32_1 = arith.constant 0 : i32
    return %c0_i32, %c0_i32_0 : i32, i32
  }
  func.func @transform_8(%arg0: i32) -> (i32, i32) {
    %c0_i32 = arith.constant 0 : i32
    %c0_i32_0 = arith.constant 0 : i32
    %c0_i32_1 = arith.constant 0 : i32
    return %c0_i32, %c0_i32_0 : i32, i32
  }
  func.func @transform_9(%arg0: i32) -> (i32, i32) {
    %c0_i32 = arith.constant 0 : i32
    %c0_i32_0 = arith.constant 0 : i32
    return %arg0, %c0_i32 : i32, i32
  }
}

</mosaic_0001>

<bundles_post_ra>
// kernel: net_forward.1
= control target key start
LH: loop header
LB: loop body
LE: loop exit
PB: predicated region body
PF: predicated region fallthrough
CT: control target
= control target key end

     0   :  { %vm2114_vm0 = vmmov 0   ;;  %vm998_vm1 = vcmask 1041408   ;;  %vm999_vm2 = vcmask 1042432   ;;  %vm994_vm3 = vcmask 433152   ;;  %s2640_s1 = inlined_call_operand.vmem [shape: bf16[1845,64], index: 1, kind: input, shape index: {}]   ;;  %s2641_s0 = inlined_call_operand.vmem [shape: f32[8,1845], index: 0, kind: input, shape index: {}]   ;;  %s2642_s3 = inlined_call_operand.vmem [shape: bf16[64,64], index: 3, kind: input, shape index: {}]   ;;  %s2643_s5 = inlined_call_operand.vmem [shape: bf16[64,64], index: 5, kind: input, shape index: {}]   ;;  %s2644_s2 = inlined_call_operand.vmem [shape: f32[1,64], index: 2, kind: input, shape index: {}]   ;;  %s2645_s7 = inlined_call_operand.vmem [shape: bf16[64,128], index: 7, kind: input, shape index: {}]   ;;  %s2646_s4 = inlined_call_operand.vmem [shape: f32[1,64], index: 4, kind: input, shape index: {}]   ;;  %s2647_s6 = inlined_call_operand.vmem [shape: f32[1,64], index: 6, kind: input, shape index: {}]   ;;  %s2648_s8 = inlined_call_operand.vmem [shape: f32[1,128], index: 8, kind: input, shape index: {}]   ;;  %s2649_s9 = inlined_call_operand.vmem [shape: bf16[8,128], index: 9, kind: output, shape index: {}]  }
   0x1   :  { %v1979_v0 = vld [vmem:[%s2640_s1 + $0x40] sm:$0xff]   ;;  %v1983_v4 = vld [vmem:[%s2640_s1 + $0x48] sm:$0xff]   ;;  %v1987_v8 = vld [vmem:[%s2640_s1 + $0x50] sm:$0xff]   ;;  %vm1366_vm4 = vcmask 523264  }
   0x2   :  { %v1980_v1 = vld [vmem:[%s2640_s1] sm:$0xff]   ;;  %1749 = vmatprep.subr.bf16.mxu0 %v1979_v0  ;;  %v1984_v5 = vld [vmem:[%s2640_s1 + $0x8] sm:$0xff]   ;;  %v1988_v9 = vld [vmem:[%s2640_s1 + $0x10] sm:$0xff]  }
   0x3   :  { %v1981_v2 = vld [vmem:[%s2640_s1 + $0xc0] sm:$0xff]   ;;  %1750 = vmatpush3.bf16.msra.mxu0 %v1980_v1  ;;  %v1985_v6 = vld [vmem:[%s2640_s1 + $0xc8] sm:$0xff]   ;;  %v1989_v10 = vld [vmem:[%s2640_s1 + $0xd0] sm:$0xff]  }
   0x4   :  { %v1982_v3 = vld [vmem:[%s2640_s1 + $0x80] sm:$0xff]   ;;  %1771 = vmatprep.subr.bf16.mxu1 %v1981_v2  ;;  %1751 = vmatprep.subr.bf16.mxu0 %v1983_v4  ;;  %v1986_v7 = vld [vmem:[%s2640_s1 + $0x88] sm:$0xff]   ;;  %v1990_v11 = vld [vmem:[%s2640_s1 + $0x90] sm:$0xff]  }
   0x5   :  { %1772 = vmatpush3.bf16.msra.mxu1 %v1982_v3  ;;  %v1991_v12 = vld [vmem:[%s2640_s1 + $0x58] sm:$0xff]   ;;  %v1995_v16 = vld [vmem:[%s2640_s1 + $0x60] sm:$0xff]   ;;  %v1999_v20 = vld [vmem:[%s2640_s1 + $0x68] sm:$0xff]  }
   0x6   :  { %1773 = vmatprep.subr.bf16.mxu1 %v1985_v6  ;;  %v1992_v13 = vld [vmem:[%s2640_s1 + $0x18] sm:$0xff]   ;;  %v1996_v17 = vld [vmem:[%s2640_s1 + $0x20] sm:$0xff]   ;;  %v2000_v21 = vld [vmem:[%s2640_s1 + $0x28] sm:$0xff]  }
   0x7   :  { %1752 = vmatpush3.bf16.msra.mxu0 %v1984_v5  ;;  %v1993_v14 = vld [vmem:[%s2640_s1 + $0xd8] sm:$0xff]   ;;  %v1997_v18 = vld [vmem:[%s2640_s1 + $0xe0] sm:$0xff]   ;;  %v2001_v22 = vld [vmem:[%s2640_s1 + $0xe8] sm:$0xff]  }
   0x8   :  { %1753 = vmatprep.subr.bf16.mxu0 %v1987_v8  ;;  %v1994_v15 = vld [vmem:[%s2640_s1 + $0x98] sm:$0xff]   ;;  %v1998_v19 = vld [vmem:[%s2640_s1 + $0xa0] sm:$0xff]   ;;  %v2002_v23 = vld [vmem:[%s2640_s1 + $0xa8] sm:$0xff]  }
   0x9   :  { %1774 = vmatpush3.bf16.msra.mxu1 %v1986_v7  ;;  %v2003_v24 = vld [vmem:[%s2640_s1 + $0x70] sm:$0xff]   ;;  %v2007_v28 = vld [vmem:[%s2640_s1 + $0x78] sm:$0xff]   ;;  %v34_v31 = vld [vmem:[%s2641_s0 + $0x8] sm:$0xff] }
   0xa   :  { %1775 = vmatprep.subr.bf16.mxu1 %v1989_v10  ;;  %v2004_v25 = vld [vmem:[%s2640_s1 + $0x30] sm:$0xff]   ;;  %v2008_v29 = vld [vmem:[%s2640_s1 + $0x38] sm:$0xff]   ;;  %v49_v32 = vpack.c.bf16 %v34_v31, %v34_v31  ;;  %v33_v34 = vld [vmem:[%s2641_s0] sm:$0xff] }
   0xb   :  { %1754 = vmatpush3.bf16.msra.mxu0 %v1988_v9  ;;  %v2005_v26 = vld [vmem:[%s2640_s1 + $0xf0] sm:$0xff]   ;;  %v2009_v30 = vld [vmem:[%s2640_s1 + $0xf8] sm:$0xff]   ;;  %v48_v35 = vpack.c.bf16 %v33_v34, %v33_v34  ;;  %v2011_v36 = vld [vmem:[%s2640_s1 + $0x140] sm:$0xff]  }
   0xc   :  { %1755 = vmatprep.subr.bf16.mxu0 %v1991_v12  ;;  %v2006_v27 = vld [vmem:[%s2640_s1 + $0xb0] sm:$0xff]   ;;  %v2010_v33 = vld [vmem:[%s2640_s1 + $0xb8] sm:$0xff]   ;;  %1037 = vmatprep.mubr.bf16.mxu0 %v49_v32  ;;  %v2012_v39 = vld [vmem:[%s2640_s1 + $0x100] sm:$0xff]  }
   0xd   :  { %1776 = vmatpush3.bf16.msra.mxu1 %v1990_v11  ;;  %v36_v37 = vld [vmem:[%s2641_s0 + $0x18] sm:$0xff]  ;;  %v35_v40 = vld [vmem:[%s2641_s0 + $0x10] sm:$0xff]  ;;  %v2013_v42 = vld [vmem:[%s2640_s1 + $0x1c0] sm:$0xff]  }
   0xe   :  { %1777 = vmatprep.subr.bf16.mxu1 %v1993_v14  ;;  %v51_v38 = vpack.c.bf16 %v36_v37, %v36_v37  ;;  %v50_v41 = vpack.c.bf16 %v35_v40, %v35_v40  ;;  %v2014_v43 = vld [vmem:[%s2640_s1 + $0x180] sm:$0xff]   ;;  %v2015_v44 = vld [vmem:[%s2640_s1 + $0x148] sm:$0xff]   ;;  %v2019_v48 = vld [vmem:[%s2640_s1 + $0x150] sm:$0xff]  }
   0xf   :  { %1756 = vmatpush3.bf16.msra.mxu0 %v1992_v13  ;;  %v2016_v45 = vld [vmem:[%s2640_s1 + $0x108] sm:$0xff]   ;;  %v2020_v49 = vld [vmem:[%s2640_s1 + $0x110] sm:$0xff]   ;;  %v2023_v52 = vld [vmem:[%s2640_s1 + $0x158] sm:$0xff]  }
  0x10   :  { %1757 = vmatprep.subr.bf16.mxu0 %v1995_v16  ;;  %1077 = vmatprep.mubr.bf16.mxu1 %v51_v38  ;;  %v2017_v46 = vld [vmem:[%s2640_s1 + $0x1c8] sm:$0xff]   ;;  %v2021_v50 = vld [vmem:[%s2640_s1 + $0x1d0] sm:$0xff]   ;;  %v2024_v53 = vld [vmem:[%s2640_s1 + $0x118] sm:$0xff]  }
  0x11   :  { %1778 = vmatpush3.bf16.msra.mxu1 %v1994_v15  ;;  %v2018_v47 = vld [vmem:[%s2640_s1 + $0x188] sm:$0xff]   ;;  %v2022_v51 = vld [vmem:[%s2640_s1 + $0x190] sm:$0xff]   ;;  %v2025_v54 = vld [vmem:[%s2640_s1 + $0x1d8] sm:$0xff]  }
  0x12   :  { %1779 = vmatprep.subr.bf16.mxu1 %v1997_v18  ;;  %v2026_v55 = vld [vmem:[%s2640_s1 + $0x198] sm:$0xff]   ;;  %v2027_v56 = vld [vmem:[%s2640_s1 + $0x160] sm:$0xff]   ;;  %v2031_v60 = vld [vmem:[%s2640_s1 + $0x168] sm:$0xff]  }
  0x13   :  { %1758 = vmatpush3.bf16.msra.mxu0 %v1996_v17  ;;  %v2028_v57 = vld [vmem:[%s2640_s1 + $0x120] sm:$0xff]   ;;  %v2032_v61 = vld [vmem:[%s2640_s1 + $0x128] sm:$0xff]   ;;  %v2035_v0 = vld [vmem:[%s2640_s1 + $0x170] sm:$0xff]  }
  0x14   :  { %1759 = vmatprep.subr.bf16.mxu0 %v1999_v20  ;;  %v2029_v58 = vld [vmem:[%s2640_s1 + $0x1e0] sm:$0xff]   ;;  %v2033_v62 = vld [vmem:[%s2640_s1 + $0x1e8] sm:$0xff]   ;;  %v2036_v1 = vld [vmem:[%s2640_s1 + $0x130] sm:$0xff]  }
  0x15   :  { %1780 = vmatpush3.bf16.msra.mxu1 %v1998_v19  ;;  %v2030_v59 = vld [vmem:[%s2640_s1 + $0x1a0] sm:$0xff]   ;;  %v2034_v63 = vld [vmem:[%s2640_s1 + $0x1a8] sm:$0xff]   ;;  %v2037_v2 = vld [vmem:[%s2640_s1 + $0x1f0] sm:$0xff]  }
  0x16   :  { %1781 = vmatprep.subr.bf16.mxu1 %v2001_v22  ;;  %v2038_v3 = vld [vmem:[%s2640_s1 + $0x1b0] sm:$0xff]   ;;  %v2039_v4 = vld [vmem:[%s2640_s1 + $0x178] sm:$0xff]   ;;  %v38_v7 = vld [vmem:[%s2641_s0 + $0x28] sm:$0xff] }
  0x17   :  { %1760 = vmatpush3.bf16.msra.mxu0 %v2000_v21  ;;  %v2040_v5 = vld [vmem:[%s2640_s1 + $0x138] sm:$0xff]   ;;  %v53_v8 = vpack.c.bf16 %v38_v7, %v38_v7  ;;  %v37_v10 = vld [vmem:[%s2641_s0 + $0x20] sm:$0xff]  ;;  %v39_v16 = vld [vmem:[%s2641_s0 + $0x30] sm:$0xff] }
  0x18   :  { %1761 = vmatprep.subr.bf16.mxu0 %v2003_v24  ;;  %v2041_v6 = vld [vmem:[%s2640_s1 + $0x1f8] sm:$0xff]   ;;  %v52_v11 = vpack.c.bf16 %v37_v10, %v37_v10  ;;  %v2043_v12 = vld [vmem:[%s2640_s1 + $0x240] sm:$0xff]   ;;  %v54_v17 = vpack.c.bf16 %v39_v16, %v39_v16  ;;  %v2047_v20 = vld [vmem:[%s2640_s1 + $0x248] sm:$0xff]  }
  0x19   :  { %1782 = vmatpush3.bf16.msra.mxu1 %v2002_v23  ;;  %v2042_v9 = vld [vmem:[%s2640_s1 + $0x1b8] sm:$0xff]   ;;  %v2044_v15 = vld [vmem:[%s2640_s1 + $0x200] sm:$0xff]   ;;  %v2048_v21 = vld [vmem:[%s2640_s1 + $0x208] sm:$0xff]  }
  0x1a   :  { %1783 = vmatprep.subr.bf16.mxu1 %v2005_v26  ;;  %v40_v13 = vld [vmem:[%s2641_s0 + $0x38] sm:$0xff]  ;;  %v2045_v18 = vld [vmem:[%s2640_s1 + $0x2c0] sm:$0xff]   ;;  %v2049_v22 = vld [vmem:[%s2640_s1 + $0x2c8] sm:$0xff]  }
  0x1b   :  { %1762 = vmatpush3.bf16.msra.mxu0 %v2004_v25  ;;  %v55_v14 = vpack.c.bf16 %v40_v13, %v40_v13  ;;  %v2046_v19 = vld [vmem:[%s2640_s1 + $0x280] sm:$0xff]   ;;  %v2050_v23 = vld [vmem:[%s2640_s1 + $0x288] sm:$0xff]   ;;  %v2051_v24 = vld [vmem:[%s2640_s1 + $0x250] sm:$0xff]  }
  0x1c   :  { %1763 = vmatprep.subr.bf16.mxu0 %v2007_v28  ;;  %v2052_v25 = vld [vmem:[%s2640_s1 + $0x210] sm:$0xff]   ;;  %v2055_v28 = vld [vmem:[%s2640_s1 + $0x258] sm:$0xff]   ;;  %v2059_v32 = vld [vmem:[%s2640_s1 + $0x260] sm:$0xff]  }
  0x1d   :  { %1784 = vmatpush3.bf16.msra.mxu1 %v2006_v27  ;;  %v2053_v26 = vld [vmem:[%s2640_s1 + $0x2d0] sm:$0xff]   ;;  %v2058_v31 = vld [vmem:[%s2640_s1 + $0x298] sm:$0xff]   ;;  %v2061_v34 = vld [vmem:[%s2640_s1 + $0x2e0] sm:$0xff]  }
  0x1e   :  { %1785 = vmatprep.subr.bf16.mxu1 %v2009_v30  ;;  %v2054_v27 = vld [vmem:[%s2640_s1 + $0x290] sm:$0xff]   ;;  %v2057_v30 = vld [vmem:[%s2640_s1 + $0x2d8] sm:$0xff]   ;;  %v2064_v37 = vld [vmem:[%s2640_s1 + $0x228] sm:$0xff]  }
  0x1f   :  { %1764 = vmatpush3.bf16.msra.mxu0 %v2008_v29  ;;  %v2056_v29 = vld [vmem:[%s2640_s1 + $0x218] sm:$0xff]   ;;  %v2065_v38 = vld [vmem:[%s2640_s1 + $0x2e8] sm:$0xff]   ;;  %v2067_v40 = vld [vmem:[%s2640_s1 + $0x270] sm:$0xff]  }
  0x20   :  { %1793 = vmatprep.subr.bf16.mxu0 %v2011_v36  ;;  %v2063_v36 = vld [vmem:[%s2640_s1 + $0x268] sm:$0xff]   ;;  %v2089_v13 = vld [vmem:[%s2640_s1 + $0x370] sm:$0xff]  }
  0x21   :  { %1786 = vmatpush3.bf16.msra.mxu1 %v2010_v33  ;;  %v2060_v33 = vld [vmem:[%s2640_s1 + $0x220] sm:$0xff]  }
  0x22   :  { %1038 = vmatmul.mubr.bf16.vlgmr.msra.gmra.mrb[0].mxu0 %v48_v35  ;;  %1815 = vmatprep.subr.bf16.mxu1 %v2013_v42  ;;  %v2062_v35 = vld [vmem:[%s2640_s1 + $0x2a0] sm:$0xff]   ;;  %v2069_v42 = vld [vmem:[%s2640_s1 + $0x2f0] sm:$0xff]  }
  0x23   :  { %1794 = vmatpush3.bf16.msra.mxu0 %v2012_v39  ;;  %1117 = vmatprep.mubr.bf16.mxu0 %v53_v8  ;;  %v2066_v39 = vld [vmem:[%s2640_s1 + $0x2a8] sm:$0xff]   ;;  %v2091_v8 = vld [vmem:[%s2640_s1 + $0x390] sm:$0xff]  }
  0x24   :  { %1078 = vmatmul.mubr.bf16.vlgmr.msra.gmra.mrb[0].mxu1 %v50_v41  ;;  %1795 = vmatprep.subr.bf16.mxu0 %v2015_v44  ;;  %v2068_v41 = vld [vmem:[%s2640_s1 + $0x230] sm:$0xff]   ;;  %v2071_v44 = vld [vmem:[%s2640_s1 + $0x278] sm:$0xff]  }
  0x25   :  { %1816 = vmatpush3.bf16.msra.mxu1 %v2014_v43  ;;  %1157 = vmatprep.mubr.bf16.mxu1 %v55_v14  ;;  %v2070_v43 = vld [vmem:[%s2640_s1 + $0x2b0] sm:$0xff]  }
  0x26   :  { %1817 = vmatprep.subr.bf16.mxu1 %v2017_v46  ;;  %v2073_v46 = vld [vmem:[%s2640_s1 + $0x2f8] sm:$0xff]  }
  0x27   :  { %1796 = vmatpush3.bf16.msra.mxu0 %v2016_v45  ;;  %v2072_v45 = vld [vmem:[%s2640_s1 + $0x238] sm:$0xff]  }
  0x28   :  { %1797 = vmatprep.subr.bf16.mxu0 %v2019_v48 }
  0x29   :  { %1818 = vmatpush3.bf16.msra.mxu1 %v2018_v47  ;;  %v42_v47 = vld [vmem:[%s2641_s0 + $0x48] sm:$0xff] }
  0x2a   :  { %1819 = vmatprep.subr.bf16.mxu1 %v2021_v50  ;;  %v57_v48 = vpack.c.bf16 %v42_v47, %v42_v47  ;;  %v41_v50 = vld [vmem:[%s2641_s0 + $0x40] sm:$0xff] }
  0x2b   :  { %1798 = vmatpush3.bf16.msra.mxu0 %v2020_v49  ;;  %v2074_v49 = vld [vmem:[%s2640_s1 + $0x2b8] sm:$0xff]  }
  0x2c   :  { %1799 = vmatprep.subr.bf16.mxu0 %v2023_v52  ;;  %v2075_v52 = vld [vmem:[%s2640_s1 + $0x340] sm:$0xff]  }
  0x2d   :  { %1820 = vmatpush3.bf16.msra.mxu1 %v2022_v51  ;;  %v56_v51 = vpack.c.bf16 %v41_v50, %v41_v50 }
  0x2e   :  { %1821 = vmatprep.subr.bf16.mxu1 %v2025_v54 }
  0x2f   :  { %1800 = vmatpush3.bf16.msra.mxu0 %v2024_v53  ;;  %v44_v53 = vld [vmem:[%s2641_s0 + $0x58] sm:$0xff] }
  0x30   :  { %1801 = vmatprep.subr.bf16.mxu0 %v2027_v56  ;;  %v59_v54 = vpack.c.bf16 %v44_v53, %v44_v53  ;;  %v43_v56 = vld [vmem:[%s2641_s0 + $0x50] sm:$0xff] }
  0x31   :  { %1822 = vmatpush3.bf16.msra.mxu1 %v2026_v55  ;;  %v2076_v55 = vld [vmem:[%s2640_s1 + $0x300] sm:$0xff]  }
  0x32   :  { %1823 = vmatprep.subr.bf16.mxu1 %v2029_v58  ;;  %v58_v58 = vpack.c.bf16 %v43_v56, %v43_v56 }
  0x33   :  { %1802 = vmatpush3.bf16.msra.mxu0 %v2028_v57  ;;  %v2113_v57 = vmov 0.0  }
  0x34   :  { %1803 = vmatprep.subr.bf16.mxu0 %v2031_v60  ;;  %v2078_v60 = vld [vmem:[%s2640_s1 + $0x308] sm:$0xff]  }
  0x35   :  { %1824 = vmatpush3.bf16.msra.mxu1 %v2030_v59  ;;  %v2077_v59 = vld [vmem:[%s2640_s1 + $0x348] sm:$0xff]  }
  0x36   :  { %1825 = vmatprep.subr.bf16.mxu1 %v2033_v62  ;;  %v2080_v62 = vld [vmem:[%s2640_s1 + $0x310] sm:$0xff]  }
  0x37   :  { %1804 = vmatpush3.bf16.msra.mxu0 %v2032_v61  ;;  %v2079_v61 = vld [vmem:[%s2640_s1 + $0x350] sm:$0xff]  }
  0x38   :  { %1805 = vmatprep.subr.bf16.mxu0 %v2035_v0  ;;  %v2085_v0 = vld [vmem:[%s2640_s1 + $0x380] sm:$0xff]  }
  0x39   :  { %1826 = vmatpush3.bf16.msra.mxu1 %v2034_v63  ;;  %v2081_v63 = vld [vmem:[%s2640_s1 + $0x358] sm:$0xff]  }
  0x3a   :  { %1827 = vmatprep.subr.bf16.mxu1 %v2037_v2  ;;  %v2083_v2 = vld [vmem:[%s2640_s1 + $0x360] sm:$0xff]  }
  0x3b   :  { %1806 = vmatpush3.bf16.msra.mxu0 %v2036_v1  ;;  %v2082_v1 = vld [vmem:[%s2640_s1 + $0x318] sm:$0xff]  }
  0x3c   :  { %1807 = vmatprep.subr.bf16.mxu0 %v2039_v4  ;;  %v2084_v4 = vld [vmem:[%s2640_s1 + $0x320] sm:$0xff]  }
  0x3d   :  { %1828 = vmatpush3.bf16.msra.mxu1 %v2038_v3  ;;  %v2088_v3 = vld [vmem:[%s2640_s1 + $0x388] sm:$0xff]  }
  0x3e   :  { %1829 = vmatprep.subr.bf16.mxu1 %v2041_v6  ;;  %v2115_v6 = vmov 65535  }
  0x3f   :  { %1808 = vmatpush3.bf16.msra.mxu0 %v2040_v5  ;;  %v2086_v5 = vld [vmem:[%s2640_s1 + $0x368] sm:$0xff]   ;;  %v1000_v7 = vsel %vm998_vm1, 4294967295, %v2115_v6 }
  0x40   :  { %1837 = vmatprep.subr.bf16.mxu0 %v2043_v12  ;;  %v1001_v10 = vsel %vm999_vm2, %v1000_v7, 0  ;;  %v2094_v12 = vld [vmem:[%s2640_s1 + $0x398] ss:$0 sps:$4 sm:$0x77]  }
  0x41   :  { %1830 = vmatpush3.bf16.msra.mxu1 %v2042_v9  ;;  %v2087_v9 = vld [vmem:[%s2640_s1 + $0x328] sm:$0xff]   ;;  %v1003_v16 = vand.u32 %v2094_v12, %v1001_v10 }
  0x42   :  { %1118 = vmatmul.mubr.bf16.vlgmr.msra.gmra.mrb[4].mxu0 %v52_v11  ;;  %1859 = vmatprep.subr.bf16.mxu1 %v2045_v18  ;;  %v46_v11 = vld [vmem:[%s2641_s0 + $0x68] sm:$0xff] }
  0x43   :  { %1838 = vmatpush3.bf16.msra.mxu0 %v2044_v15  ;;  %1197 = vmatprep.mubr.bf16.mxu0 %v57_v48  ;;  %v61_v14 = vpack.c.bf16 %v46_v11, %v46_v11  ;;  %v47_v15 = vld [vmem:[%s2641_s0 + $0x70] sm:$0xff] }
  0x44   :  { %1158 = vmatmul.mubr.bf16.vlgmr.msra.gmra.mrb[4].mxu1 %v54_v17  ;;  %1839 = vmatprep.subr.bf16.mxu0 %v2047_v20  ;;  %v2090_v17 = vld [vmem:[%s2640_s1 + $0x330] sm:$0xff]   ;;  %v62_v18 = vpack.c.bf16 %v47_v15, %v47_v15  ;;  %v2093_v20 = vld [vmem:[%s2640_s1 + $0x338] sm:$0xff]  }
  0x45   :  { %1860 = vmatpush3.bf16.msra.mxu1 %v2046_v19  ;;  %1237 = vmatprep.mubr.bf16.mxu1 %v59_v54  ;;  %v2092_v19 = vld [vmem:[%s2640_s1 + $0x378] sm:$0xff]  }
  0x46   :  { %1861 = vmatprep.subr.bf16.mxu1 %v2049_v22 }
  0x47   :  { %1840 = vmatpush3.bf16.msra.mxu0 %v2048_v21  ;;  %v45_v21 = vld [vmem:[%s2641_s0 + $0x60] sm:$0xff] }
  0x48   :  { %1841 = vmatprep.subr.bf16.mxu0 %v2051_v24  ;;  %v60_v22 = vpack.c.bf16 %v45_v21, %v45_v21  ;;  %v2096_v24 = vld [vmem:[%s2642_s3 + $0x8] sm:$0xff]  }
  0x49   :  { %1862 = vmatpush3.bf16.msra.mxu1 %v2050_v23  ;;  %v2095_v23 = vld [vmem:[%s2642_s3] sm:$0xff]  }
  0x4a   :  { %1863 = vmatprep.subr.bf16.mxu1 %v2053_v26  ;;  %v2098_v26 = vld [vmem:[%s2642_s3 + $0x18] sm:$0xff]  }
  0x4b   :  { %1842 = vmatpush3.bf16.msra.mxu0 %v2052_v25  ;;  %v2097_v25 = vld [vmem:[%s2642_s3 + $0x10] sm:$0xff]  }
  0x4c   :  { %1843 = vmatprep.subr.bf16.mxu0 %v2055_v28  ;;  %v2100_v28 = vld [vmem:[%s2643_s5 + $0x8] sm:$0xff]  }
  0x4d   :  { %1864 = vmatpush3.bf16.msra.mxu1 %v2054_v27  ;;  %v2099_v27 = vld [vmem:[%s2643_s5] sm:$0xff]  }
  0x4e   :  { %1865 = vmatprep.subr.bf16.mxu1 %v2057_v30  ;;  %v1613_v30 = vld [vmem:[%s2644_s2] ss:$0 sm:$0xff] }
  0x4f   :  { %1844 = vmatpush3.bf16.msra.mxu0 %v2056_v29 }
  0x50   :  { %1845 = vmatprep.subr.bf16.mxu0 %v2059_v32 }
  0x51   :  { %1866 = vmatpush3.bf16.msra.mxu1 %v2058_v31 }
  0x52   :  { %1867 = vmatprep.subr.bf16.mxu1 %v2061_v34 }
  0x53   :  { %1846 = vmatpush3.bf16.msra.mxu0 %v2060_v33 }
  0x54   :  { %1847 = vmatprep.subr.bf16.mxu0 %v2063_v36 }
  0x55   :  { %1868 = vmatpush3.bf16.msra.mxu1 %v2062_v35 }
  0x56   :  { %1869 = vmatprep.subr.bf16.mxu1 %v2065_v38 }
  0x57   :  { %1848 = vmatpush3.bf16.msra.mxu0 %v2064_v37 }
  0x58   :  { %1849 = vmatprep.subr.bf16.mxu0 %v2067_v40 }
  0x59   :  { %1870 = vmatpush3.bf16.msra.mxu1 %v2066_v39 }
  0x5a   :  { %1871 = vmatprep.subr.bf16.mxu1 %v2069_v42 }
  0x5b   :  { %1850 = vmatpush3.bf16.msra.mxu0 %v2068_v41 }
  0x5c   :  { %1851 = vmatprep.subr.bf16.mxu0 %v2071_v44 }
  0x5d   :  { %1872 = vmatpush3.bf16.msra.mxu1 %v2070_v43 }
  0x5e   :  { %1873 = vmatprep.subr.bf16.mxu1 %v2073_v46 }
  0x5f   :  { %1852 = vmatpush3.bf16.msra.mxu0 %v2072_v45 }
  0x60   :  { %1881 = vmatprep.subr.bf16.mxu0 %v2075_v52 }
  0x61   :  { %1874 = vmatpush3.bf16.msra.mxu1 %v2074_v49 }
  0x62   :  { %1923 = vmatprep.subr.bf16.mxu1 %v2113_v57  ;;  %1198 = vmatmul.mubr.bf16.vlgmr.msra.gmra.mrb[8].mxu0 %v56_v51 }
  0x63   :  { %1882 = vmatpush3.bf16.msra.mxu0 %v2076_v55  ;;  %1277 = vmatprep.mubr.bf16.mxu0 %v61_v14 }
  0x64   :  { %1238 = vmatmul.mubr.bf16.vlgmr.msra.gmra.mrb[8].mxu1 %v58_v58  ;;  %1883 = vmatprep.subr.bf16.mxu0 %v2077_v59 }
  0x65   :  { %1931 = vmatprep.mubr.msk.bf16.mxu1 %vm2114_vm0, %v2113_v57  ;;  %1924 = vmatpush3.bf16.msra.mxu1 %v2085_v0 }
  0x66   :  { %1925 = vmatprep.subr.bf16.mxu1 %v2113_v57 }
  0x67   :  { %1884 = vmatpush3.bf16.msra.mxu0 %v2078_v60 }
  0x68   :  { %1885 = vmatprep.subr.bf16.mxu0 %v2079_v61 }
  0x69   :  { %1926 = vmatpush3.bf16.msra.mxu1 %v2088_v3 }
  0x6a   :  { %1927 = vmatprep.subr.bf16.mxu1 %v2113_v57 }
  0x6b   :  { %1886 = vmatpush3.bf16.msra.mxu0 %v2080_v62 }
  0x6c   :  { %1887 = vmatprep.subr.bf16.mxu0 %v2081_v63 }
  0x6d   :  { %1928 = vmatpush3.bf16.msra.mxu1 %v2091_v8 }
  0x6e   :  { %1929 = vmatprep.subr.bf16.mxu1 %v2113_v57 }
  0x6f   :  { %1888 = vmatpush3.bf16.msra.mxu0 %v2082_v1 }
  0x70   :  { %1889 = vmatprep.subr.bf16.mxu0 %v2083_v2 }
  0x71   :  { %1930 = vmatpush3.bf16.msra.mxu1 %v1003_v16  ;;  %v2101_v16 = vld [vmem:[%s2643_s5 + $0x10] sm:$0xff]  }
  0x72   :  { %1935 = vmatprep.subr.bf16.mxu1 %v2113_v57 }
  0x73   :  { %1890 = vmatpush3.bf16.msra.mxu0 %v2084_v4 }
  0x74   :  { %1891 = vmatprep.subr.bf16.mxu0 %v2086_v5  ;;  %1932 = vmatmul.mubr.msk.bf16.vlgmr.msra.gmra.mrb[12].mxu1 %vm994_vm3, %v62_v18  ;;  %v2103_v18 = vld [vmem:[%s2645_s7] sm:$0xff]  }
  0x75   :  { %1943 = vmatprep.mubr.msk.bf16.mxu1 %vm2114_vm0, %v2113_v57  ;;  %1936 = vmatpush3.bf16.msra.mxu1 %v2095_v23 }
  0x76   :  { %1937 = vmatprep.subr.bf16.mxu1 %v2113_v57 }
  0x77   :  { %1892 = vmatpush3.bf16.msra.mxu0 %v2087_v9 }
  0x78   :  { %1893 = vmatprep.subr.bf16.mxu0 %v2089_v13 }
  0x79   :  { %1938 = vmatpush3.bf16.msra.mxu1 %v2096_v24 }
  0x7a   :  { %1939 = vmatprep.subr.bf16.mxu1 %v2113_v57 }
  0x7b   :  { %1894 = vmatpush3.bf16.msra.mxu0 %v2090_v17  ;;  %v2102_v17 = vld [vmem:[%s2643_s5 + $0x18] sm:$0xff]  }
  0x7c   :  { %1895 = vmatprep.subr.bf16.mxu0 %v2092_v19  ;;  %v2104_v19 = vld [vmem:[%s2645_s7 + $0x8] sm:$0xff]  }
  0x7d   :  { %1940 = vmatpush3.bf16.msra.mxu1 %v2097_v25 }
  0x7e   :  { %1941 = vmatprep.subr.bf16.mxu1 %v2113_v57 }
  0x7f   :  { %1896 = vmatpush3.bf16.msra.mxu0 %v2093_v20  ;;  %v1731_v20 = vld [vmem:[%s2646_s4] ss:$0 sm:$0xff] }
  0x80   :  { %1947 = vmatprep.subr.bf16.mxu0 %v2113_v57 }
  0x81   :  { %1942 = vmatpush3.bf16.msra.mxu1 %v2098_v26 }
  0x82   :  { %1278 = vmatmul.mubr.bf16.vlgmr.msra.gmra.mrb[12].mxu0 %v60_v22  ;;  %1959 = vmatprep.subr.bf16.mxu1 %v2113_v57 }
  0x83   :  { %1955 = vmatprep.mubr.msk.bf16.mxu0 %vm2114_vm0, %v2113_v57  ;;  %1948 = vmatpush3.bf16.msra.mxu0 %v2099_v27 }
  0x84   :  { %1949 = vmatprep.subr.bf16.mxu0 %v2113_v57 }
  0x87   :  { %1950 = vmatpush3.bf16.msra.mxu0 %v2100_v28  ;;  %v2105_v28 = vld [vmem:[%s2645_s7 + $0x10] sm:$0xff]  }
  0x88   :  { %1951 = vmatprep.subr.bf16.mxu0 %v2113_v57 }
  0x8b   :  { %1952 = vmatpush3.bf16.msra.mxu0 %v2101_v16 }
  0x8c   :  { %1953 = vmatprep.subr.bf16.mxu0 %v2113_v57 }
  0x8f   :  { %1954 = vmatpush3.bf16.msra.mxu0 %v2102_v17 }
  0xf5   :  { %v1765_v29 = vpop.f32.mrb[0].mxu0 }
  0xf6   :  { %v1766_v31 = vpop.f32.mrb[1].mxu0 }
  0xf7   :  { %v1767_v32 = vadd.f32 %v1766_v31, %v1765_v29  ;;  %v1768_v33 = vpop.f32.mrb[2].mxu0  ;;  %v1787_v34 = vpop.f32.mrb[0].mxu1  ;;  %v2106_v29 = vld [vmem:[%s2645_s7 + $0x18] sm:$0xff]   ;;  %s2116_s7 = smov 127  }
  0xf8   :  { %v1769_v35 = vpop.f32.mrb[3].mxu0  ;;  %v1788_v37 = vpop.f32.mrb[1].mxu1 }
  0xf9   :  { %v1040_v36 = vadd.f32 %v1767_v32, %v1613_v30  ;;  %v1789_v38 = vadd.f32 %v1788_v37, %v1787_v34  ;;  %v1790_v39 = vpop.f32.mrb[2].mxu1  ;;  %v1737_v30 = vld [vmem:[%s2647_s6] ss:$0 sm:$0xff]  ;;  %s2117_s6 = smov 1  }
  0xfa   :  { %v1791_v40 = vpop.f32.mrb[3].mxu1 }
  0xfb   :  { %v1080_v41 = vadd.f32 %v1789_v38, %v1040_v36 }
 0x115   :  { %v1809_v42 = vpop.f32.mrb[4].mxu0 }
 0x116   :  { %v1810_v43 = vpop.f32.mrb[5].mxu0 }
 0x117   :  { %v1811_v44 = vadd.f32 %v1810_v43, %v1809_v42  ;;  %v1812_v45 = vpop.f32.mrb[6].mxu0  ;;  %v1831_v46 = vpop.f32.mrb[4].mxu1 }
 0x118   :  { %v1813_v47 = vpop.f32.mrb[7].mxu0  ;;  %v1832_v49 = vpop.f32.mrb[5].mxu1 }
 0x119   :  { %v1120_v48 = vadd.f32 %v1811_v44, %v1080_v41  ;;  %v1833_v50 = vadd.f32 %v1832_v49, %v1831_v46  ;;  %v1834_v51 = vpop.f32.mrb[6].mxu1  ;;  %v2118_v49 = vmov 0  }
 0x11a   :  { %v1835_v52 = vpop.f32.mrb[7].mxu1  ;;  %1977 = vset.pattern.permute.xlu1 %v2118_v49  ;;  %1978 = vset.pattern.permute.xlu0 %v2118_v49 }
 0x11b   :  { %v1160_v53 = vadd.f32 %v1833_v50, %v1120_v48 }
 0x135   :  { %v1853_v54 = vpop.f32.mrb[8].mxu0 }
 0x136   :  { %v1854_v55 = vpop.f32.mrb[9].mxu0 }
 0x137   :  { %v1855_v56 = vadd.f32 %v1854_v55, %v1853_v54  ;;  %v1856_v58 = vpop.f32.mrb[10].mxu0  ;;  %v1875_v59 = vpop.f32.mrb[8].mxu1 }
 0x138   :  { %v1857_v60 = vpop.f32.mrb[11].mxu0  ;;  %v1876_v61 = vpop.f32.mrb[9].mxu1 }
 0x139   :  { %v1200_v62 = vadd.f32 %v1855_v56, %v1160_v53  ;;  %v1877_v63 = vadd.f32 %v1876_v61, %v1875_v59  ;;  %v1878_v0 = vpop.f32.mrb[10].mxu1 }
 0x13a   :  { %v1879_v1 = vpop.f32.mrb[11].mxu1 }
 0x13b   :  { %v1240_v2 = vadd.f32 %v1877_v63, %v1200_v62 }
 0x147   :  { %v1319_v3 = vpop.f32.mrb[12].mxu1 }
 0x148   :  { %v1933_v4 = vpop.f32.mrb[13].mxu1 }
 0x149   :  { %v1322_v5 = vpop.f32.mrb[14].mxu1 }
 0x14a   :  { %v1934_v6 = vpop.f32.mrb[15].mxu1 }
 0x155   :  { %v1897_v7 = vpop.f32.mrb[12].mxu0 }
 0x156   :  { %v1898_v8 = vpop.f32.mrb[13].mxu0 }
 0x157   :  { %v1899_v9 = vadd.f32 %v1898_v8, %v1897_v7  ;;  %v1900_v10 = vpop.f32.mrb[14].mxu0 }
 0x158   :  { %v1901_v11 = vpop.f32.mrb[15].mxu0 }
 0x159   :  { %v1280_v12 = vadd.f32 %v1899_v9, %v1240_v2 }
 0x15b   :  { %v1320_v13 = vadd.f32 %v1319_v3, %v1280_v12 }
 0x15d   :  { %v1325_v14 = vmax.f32 %v1320_v13, 0.0 }
 0x15f   :  { %v1326_v15 = vpack.c.bf16 %v1325_v14, %v1325_v14 }
 0x161   :  { %1944 = vmatmul.mubr.msk.bf16.vlgmr.msra.gmra.mrb[16].mxu1 %vm1366_vm4, %v1326_v15 }
 0x162   :  { %1967 = vmatprep.mubr.msk.bf16.mxu1 %vm2114_vm0, %v2113_v57  ;;  %1960 = vmatpush3.bf16.msra.mxu1 %v2103_v18 }
 0x163   :  { %1961 = vmatprep.subr.bf16.mxu1 %v2113_v57 }
 0x166   :  { %1962 = vmatpush3.bf16.msra.mxu1 %v2104_v19 }
 0x167   :  { %1963 = vmatprep.subr.bf16.mxu1 %v2113_v57 }
 0x16a   :  { %1964 = vmatpush3.bf16.msra.mxu1 %v2105_v28 }
 0x16b   :  { %1965 = vmatprep.subr.bf16.mxu1 %v2113_v57  ;;  %v1743_v57 = vld [vmem:[%s2648_s8] ss:$0 sm:$0xff] }
 0x16e   :  { %1966 = vmatpush3.bf16.msra.mxu1 %v2106_v29 }
 0x234   :  { %v1404_v21 = vpop.f32.mrb[16].mxu1 }
 0x235   :  { %v1405_v22 = vadd.f32 %v1731_v20, %v1404_v21  ;;  %v1945_v23 = vpop.f32.mrb[17].mxu1 }
 0x236   :  { %v1407_v24 = vpop.f32.mrb[18].mxu1 }
 0x237   :  { %v1410_v25 = vmax.f32 %v1405_v22, 0.0  ;;  %v1946_v26 = vpop.f32.mrb[19].mxu1 }
 0x239   :  { %v1411_v27 = vpack.c.bf16 %v1410_v25, %v1410_v25 }
 0x23b   :  { %1956 = vmatmul.mubr.msk.bf16.vlgmr.msra.gmra.mrb[16].mxu0 %vm1366_vm4, %v1411_v27 }
 0x30e   :  { %v1488_v31 = vpop.f32.mrb[16].mxu0 }
 0x30f   :  { %v1489_v32 = vadd.f32 %v1737_v30, %v1488_v31  ;;  %v1957_v33 = vpop.f32.mrb[17].mxu0 }
 0x310   :  { %v1491_v34 = vpop.f32.mrb[18].mxu0 }
 0x311   :  { %v1494_v35 = vmax.f32 %v1489_v32, 0.0  ;;  %v1958_v36 = vpop.f32.mrb[19].mxu0 }
 0x313   :  { %v1495_v37 = vpack.c.bf16 %v1494_v35, %v1494_v35 }
 0x315   :  { %1968 = vmatmul.mubr.msk.bf16.vlgmr.msra.gmra.mrb[20].mxu1 %vm1366_vm4, %v1495_v37 }
 0x3e8   :  { %v1572_v38 = vpop.f32.mrb[20].mxu1 }
 0x3e9   :  { %v1573_v39 = vadd.f32 %v1743_v57, %v1572_v38  ;;  %v1969_v40 = vpop.f32.mrb[21].mxu1 }
 0x3ea   :  { %v1575_v41 = vpop.f32.mrb[22].mxu1 }
 0x3eb   :  { %1579 = vrot.lane.b32.xlu0 %v1573_v39, %s2116_s7  ;;  %v1970_v42 = vpop.f32.mrb[23].mxu1 }
 0x45d   :  { %v1580_v43 = vpop.permute.xlu0 %1579 }
 0x45e   :  { %v1582_v44 = vmax.f32 %v1573_v39, %v1580_v43 }
 0x460   :  { %1587 = vrot.lane.b32.xlu0 %v1582_v44, %s2117_s6  ;;  %v1583_v50 = vsub.f32 %v1573_v39, %v1582_v44 }
 0x462   :  { %v1584_v51 = vmul.f32 1.442695, %v1583_v50 }
 0x4d2   :  { %v1588_v45 = vpop.permute.xlu0 %1587 }
 0x4d3   :  { %v1590_v46 = vsub.f32 %v1573_v39, %v1588_v45 }
 0x4d5   :  { %v1591_v47 = vmul.f32 1.442695, %v1590_v46 }
 0x4d7   :  { %2107 = vpow2.f32 %v1591_v47 }
 0x4d8   :  { %2109 = vpow2.f32 %v1584_v51 }
 0x4e1   :  { %v2108_v48 = vpop.eup %2107 }
 0x4e2   :  { %1594 = vrot.lane.b32.xlu1 %v2108_v48, %s2116_s7  ;;  %v2110_v52 = vpop.eup %2109 }
 0x554   :  { %v1595_v53 = vpop.permute.xlu1 %1594 }
 0x555   :  { %v1597_v54 = vadd.f32 %v2110_v52, %v1595_v53 }
 0x557   :  { %2111 = vlog2.f32 %v1597_v54 }
 0x561   :  { %v2112_v55 = vpop.eup %2111 }
 0x562   :  { %v1599_v56 = vmul.f32 0.6931472, %v2112_v55 }
 0x564   :  { %v1600_v58 = vadd.f32 %v1599_v56, %v1582_v44 }
 0x566   :  { %1603 = vperm.xlu1 %1977, %v1600_v58  }
 0x5e5   :  { %v1604_v59 = vpop.permute.xlu1 %1603 }
 0x5e6   :  { %v1606_v60 = vsub.f32 %v1573_v39, %v1604_v59 }
 0x5e8   :  { %v1607_v61 = vpack.c.bf16 %v1606_v60, %v1606_v60 }
 0x5ea   :  { %1608 = vst [vmem:[%s2649_s9] sm:$0xf] %v1607_v61 }

</bundles_post_ra>
